<compile_context>
chip_gen: v6e
topology: v6e:2x2x1
jax: 0.10.0
libtpu: 0.0.40
codegen_flags: <defaults>
</compile_context>

<pallas_src>
import functools

import jax
import jax.numpy as jnp
import numpy as np
from jax.experimental import pallas as pl
from jax.experimental.pallas import tpu as pltpu


def _round_up(x: int, m: int) -> int:
    return ((x + m - 1) // m) * m


def _pick_tile(dim: int, align: int, cap: int, candidates) -> int:
    """Tile size: 8/128-aligned, <= cap, minimizing padding waste."""
    padded = _round_up(dim, align)
    if padded <= cap:
        return padded  # one aligned tile (or exact size) covers the dim
    best_t, best_pad = None, None
    for t in candidates:
        if t > cap or t % align:
            continue
        pad = _round_up(dim, t) - dim
        if best_pad is None or pad < best_pad or (pad == best_pad and t > best_t):
            best_t, best_pad = t, pad
    return best_t if best_t is not None else cap


def _vmem_limit_bytes() -> int:
    """Per-generation scoped-VMEM budget with headroom for Mosaic scratch."""
    try:
        cap = pltpu.get_tpu_info().vmem_capacity_bytes
    except Exception:  # conservative fallback: smallest (v7x per-TC) VMEM
        cap = 64 * 1024 * 1024
    return min(cap * 3 // 4, 100 * 1024 * 1024)  # ~48 MiB v7x, ~96 MiB v5e/v6e


def _tile_caps(vmem_limit: int):
    """(tm_cap, tn_cap, tk_cap).

    Worst-case f32 working set 2*(tm*tk + tk*tn)*4 + 2*tm*tn*4:
      512/512/1024  -> ~10.5 MiB   (fits the ~48 MiB v7x budget)
      512/1024/2048 -> ~29.4 MiB   (fits the ~96 MiB v5e/v6e budget)
    so both configurations fit with room for deeper W buffering.
    """
    if vmem_limit >= 72 * 1024 * 1024:  # v5e / v6e: 128 MiB physical VMEM
        return 512, 1024, 2048
    return 512, 512, 1024               # v7x: 64 MiB per-TensorCore VMEM


# ------------------------------------------------------------------ kernels --


def _linear_kernel_f32out(x_ref, w_ref, b_ref, o_ref):
    """f32 output: accumulate directly into the resident output tile."""
    k = pl.program_id(2)

    @pl.when(k == 0)
    def _init():
        # Initialize with the broadcast bias: removes the epilogue RMW pass.
        o_ref[...] = jnp.broadcast_to(b_ref[...].astype(o_ref.dtype), o_ref.shape)

    # Last-dim/first-dim contraction feeds the MXU directly (W pre-transposed).
    o_ref[...] += jnp.dot(
        x_ref[...], w_ref[...], preferred_element_type=jnp.float32
    )


def _linear_kernel_lowprec_out(x_ref, w_ref, b_ref, o_ref, acc_ref):
    """Low-precision output: f32 VMEM accumulator, single cast in epilogue."""
    k = pl.program_id(2)

    @pl.when(k == 0)
    def _init():
        acc_ref[...] = jnp.broadcast_to(
            b_ref[...].astype(jnp.float32), acc_ref.shape
        )

    acc_ref[...] += jnp.dot(
        x_ref[...], w_ref[...], preferred_element_type=jnp.float32
    )

    @pl.when(k == pl.num_programs(2) - 1)
    def _finalize():
        o_ref[...] = acc_ref[...].astype(o_ref.dtype)


# -------------------------------------------------------------- pallas call --


def _pallas_linear(x_p, w_p, b_p, *, tm, tn, tk, out_dtype, vmem_limit):
    Bp, Kp = x_p.shape
    Kp2, Np = w_p.shape
    assert Kp == Kp2
    grid = (Bp // tm, Np // tn, Kp // tk)  # K innermost (reduction axis)

    # Skinny batch (one M tile) + multiple K steps: the W^T stream is the
    # entire critical path -> buffer it 3 deep to keep the HBM->VMEM pipe full.
    if grid[0] == 1 and grid[2] >= 3:
        w_spec = pl.BlockSpec(
            (tk, tn), lambda i, j, k: (k, j), pipeline_mode=pl.Buffered(3)
        )
    else:
        w_spec = pl.BlockSpec((tk, tn), lambda i, j, k: (k, j))

    f32_out = np.dtype(out_dtype) == np.dtype(np.float32)
    kernel = _linear_kernel_f32out if f32_out else _linear_kernel_lowprec_out
    scratch = [] if f32_out else [pltpu.VMEM((tm, tn), jnp.float32)]

    in_bytes = np.dtype(x_p.dtype).itemsize
    out_bytes = np.dtype(out_dtype).itemsize
    cost = pl.CostEstimate(
        flops=2 * Bp * Np * Kp,
        bytes_accessed=(Bp * Kp + Kp * Np) * in_bytes + Bp * Np * out_bytes,
        transcendentals=0,
    )

    return pl.pallas_call(
        kernel,
        out_shape=jax.ShapeDtypeStruct((Bp, Np), out_dtype),
        grid_spec=pltpu.PrefetchScalarGridSpec(
            num_scalar_prefetch=0,
            grid=grid,
            in_specs=[
                pl.BlockSpec((tm, tk), lambda i, j, k: (i, k)),  # x tile
                w_spec,                                          # W^T tile
                pl.BlockSpec((1, tn), lambda i, j, k: (0, j)),   # bias tile
            ],
            out_specs=pl.BlockSpec((tm, tn), lambda i, j, k: (i, j)),
            scratch_shapes=scratch,
        ),
        compiler_params=pltpu.CompilerParams(
            # M / N shard across TensorCores (v7x megacore); K is the
            # output-resident reduction axis.
            dimension_semantics=("parallel", "parallel", "arbitrary"),
            vmem_limit_bytes=vmem_limit,
        ),
        cost_estimate=cost,
    )(x_p, w_p, b_p)


@functools.partial(
    jax.jit,
    static_argnames=("tm", "tn", "tk", "out_features", "mxu_dtype", "vmem_limit"),
)
def _linear_apply(x, w_p, b_p, *, tm, tn, tk, out_features, mxu_dtype, vmem_limit):
    B, in_features = x.shape
    Kp, Np = w_p.shape
    out_dtype = x.dtype

    Bp = _round_up(B, tm)
    # Zero-padding is contraction-safe; padded rows/cols are sliced off below.
    x_p = jnp.pad(x, ((0, Bp - B), (0, Kp - in_features)))
    if mxu_dtype is not None:
        x_p = x_p.astype(mxu_dtype)

    out_p = _pallas_linear(
        x_p, w_p, b_p, tm=tm, tn=tn, tk=tk,
        out_dtype=out_dtype, vmem_limit=vmem_limit,
    )
    return out_p[:B, :out_features]


class LinearRegressionPallas:
    """Pallas TPU equivalent of the PyTorch LinearRegression module.

    forward(x) = x @ weight.T + bias

    The transposed / padded (optionally bf16-cast) weight and bias are prepared
    ONCE here, hoisting that HBM traffic out of the per-call path. Pass
    mxu_dtype=jnp.bfloat16 on v6e/v7x for bf16 MXU operands (f32 accumulation
    is preserved; results differ from an f32 reference at ~1e-3 level).
    """

    def __init__(self, weight, bias, *, mxu_dtype=None):
        out_features, in_features = weight.shape
        assert bias.shape == (out_features,)
        self.in_features = in_features
        self.out_features = out_features
        self.mxu_dtype = mxu_dtype
        self.vmem_limit = _vmem_limit_bytes()

        tm_cap, tn_cap, tk_cap = _tile_caps(self.vmem_limit)
        self._tm_cap = tm_cap
        self.tn = _pick_tile(out_features, 128, tn_cap,
                             (128, 256, 384, 512, 768, 1024))
        self.tk = _pick_tile(in_features, 128, tk_cap,
                             (128, 256, 512, 1024, 2048))

        Np = _round_up(out_features, self.tn)
        Kp = _round_up(in_features, self.tk)

        # Transpose + pad ONCE (not per forward): lane-dense (multiple-of-128)
        # output columns give unmasked vector stores in the kernel.
        w_t = jnp.asarray(weight).T  # (IN, OUT)
        w_p = jnp.pad(w_t, ((0, Kp - in_features), (0, Np - out_features)))
        if mxu_dtype is not None:
            w_p = w_p.astype(mxu_dtype)
        self.w_p = jax.device_put(w_p)
        self.b_p = jax.device_put(
            jnp.pad(jnp.asarray(bias), (0, Np - out_features))
            .reshape(1, Np)
            .astype(jnp.float32)
        )

    def __call__(self, x):
        assert x.shape[1] == self.in_features
        # Tight M tile for awkward batch sizes (e.g. B=300 -> tm=304, not 512).
        tm = _pick_tile(x.shape[0], 8, self._tm_cap, (128, 256, 384, 512))
        return _linear_apply(
            x, self.w_p, self.b_p,
            tm=tm, tn=self.tn, tk=self.tk,
            out_features=self.out_features,
            mxu_dtype=self.mxu_dtype,
            vmem_limit=self.vmem_limit,
        )


if __name__ == "__main__":
    # Forward-implied small shapes: batch=8, inputSize=32, outputSize=16.
    batch, input_size, output_size = 8, 32, 16

    key = jax.random.PRNGKey(0)
    kx, kw, kb = jax.random.split(key, 3)

    x = jax.random.normal(kx, (batch, input_size), dtype=jnp.float32)
    # Deterministic init mimicking nn.Linear uniform(-1/sqrt(in), 1/sqrt(in)).
    bound = 1.0 / (input_size ** 0.5)
    weight = jax.random.uniform(
        kw, (output_size, input_size), minval=-bound, maxval=bound,
        dtype=jnp.float32,
    )
    bias = jax.random.uniform(
        kb, (output_size,), minval=-bound, maxval=bound, dtype=jnp.float32
    )

    # f32 MXU operands keep the result bit-comparable to the f32 reference;
    # production on v6e/v7x can pass mxu_dtype=jnp.bfloat16 for the fast path.
    model = LinearRegressionPallas(weight, bias)
    out = model(x)
    jax.block_until_ready(out)

    ref = x @ weight.T + bias
    assert out.shape == (batch, output_size)
    assert jnp.allclose(out, ref, atol=1e-5, rtol=1e-5)

    print("KERNEL_OK")
</pallas_src>

<mosaic_0001>
module attributes {stable_mosaic.version = 11 : i64} {
  func.func @_linear_kernel_f32out(%arg0: i32, %arg1: i32, %arg2: i32, %arg3: memref<8x128xf32, #tpu.memory_space<vmem>>, %arg4: memref<128x128xf32, #tpu.memory_space<vmem>>, %arg5: memref<1x128xf32, #tpu.memory_space<vmem>>, %arg6: memref<8x128xf32, #tpu.memory_space<vmem>>) attributes {dimension_semantics = [#tpu.dimension_semantics<parallel>, #tpu.dimension_semantics<parallel>, #tpu.dimension_semantics<arbitrary>], iteration_bounds = array<i64: 1, 1, 1>, scalar_prefetch = 0 : i64, scratch_operands = 0 : i64, tpu.core_type = #tpu.core_type<tc>, window_params = [{transform_indices = @transform_0, window_bounds = array<i64: 8, 128>}, {transform_indices = @transform_1, window_bounds = array<i64: 128, 128>}, {transform_indices = @transform_2, window_bounds = array<i64: 1, 128>}, {transform_indices = @transform_3, window_bounds = array<i64: 8, 128>}]} {
    %c0_i32 = arith.constant 0 : i32
    %0 = arith.cmpi eq, %arg2, %c0_i32 : i32
    %1 = arith.extui %0 : i1 to i32
    %c0_i32_0 = arith.constant 0 : i32
    %2 = arith.cmpi ne, %1, %c0_i32_0 : i32
    scf.if %2 {
      %c0_8 = arith.constant 0 : index
      %c0_9 = arith.constant 0 : index
      %9 = vector.load %arg5[%c0_8, %c0_9] : memref<1x128xf32, #tpu.memory_space<vmem>>, vector<1x128xf32>
      %10 = vector.shape_cast %9 : vector<1x128xf32> to vector<1x128xf32>
      %11 = vector.broadcast %10 : vector<1x128xf32> to vector<8x128xf32>
      %c0_10 = arith.constant 0 : index
      %c0_11 = arith.constant 0 : index
      %12 = vector.load %arg6[%c0_10, %c0_11] : memref<8x128xf32, #tpu.memory_space<vmem>>, vector<8x128xf32>
      tpu.vector_store %arg6[%c0_10, %c0_11], %11 {strides = array<i32>} : memref<8x128xf32, #tpu.memory_space<vmem>>, vector<8x128xf32>,
    } else {
    }
    %c0 = arith.constant 0 : index
    %c0_1 = arith.constant 0 : index
    %3 = vector.load %arg6[%c0, %c0_1] : memref<8x128xf32, #tpu.memory_space<vmem>>, vector<8x128xf32>
    %c0_2 = arith.constant 0 : index
    %c0_3 = arith.constant 0 : index
    %4 = vector.load %arg3[%c0_2, %c0_3] : memref<8x128xf32, #tpu.memory_space<vmem>>, vector<8x128xf32>
    %c0_4 = arith.constant 0 : index
    %c0_5 = arith.constant 0 : index
    %5 = vector.load %arg4[%c0_4, %c0_5] : memref<128x128xf32, #tpu.memory_space<vmem>>, vector<128x128xf32>
    %cst = arith.constant dense<0.000000e+00> : vector<8x128xf32>
    %6 = tpu.matmul %4, %5, %cst {dimension_numbers = #tpu.dot_dimension_numbers<[1], [0], [0], [1], [0, 0, 1, 1], [], []>} : vector<8x128xf32>, vector<128x128xf32>, vector<8x128xf32> -> vector<8x128xf32>
    %7 = arith.addf %3, %6 : vector<8x128xf32>
    %c0_6 = arith.constant 0 : index
    %c0_7 = arith.constant 0 : index
    %8 = vector.load %arg6[%c0_6, %c0_7] : memref<8x128xf32, #tpu.memory_space<vmem>>, vector<8x128xf32>
    tpu.vector_store %arg6[%c0_6, %c0_7], %7 {strides = array<i32>} : memref<8x128xf32, #tpu.memory_space<vmem>>, vector<8x128xf32>,
    return
  }
  func.func @transform_0(%arg0: i32, %arg1: i32, %arg2: i32) -> (i32, i32) {
    %c0_i32 = arith.constant 0 : i32
    return %arg0, %arg2 : i32, i32
  }
  func.func @transform_1(%arg0: i32, %arg1: i32, %arg2: i32) -> (i32, i32) {
    %c0_i32 = arith.constant 0 : i32
    return %arg2, %arg1 : i32, i32
  }
  func.func @transform_2(%arg0: i32, %arg1: i32, %arg2: i32) -> (i32, i32) {
    %c0_i32 = arith.constant 0 : i32
    %c0_i32_0 = arith.constant 0 : i32
    return %c0_i32, %arg1 : i32, i32
  }
  func.func @transform_3(%arg0: i32, %arg1: i32, %arg2: i32) -> (i32, i32) {
    %c0_i32 = arith.constant 0 : i32
    return %arg0, %arg1 : i32, i32
  }
}

</mosaic_0001>

<bundles_post_ra>
// kernel: _linear_apply.1
= control target key start
LH: loop header
LB: loop body
LE: loop exit
PB: predicated region body
PF: predicated region fallthrough
CT: control target
= control target key end

     0   :  { %8 = vsyncpa [#allocation3], 0  ;;  %s287_s0 = inlined_call_operand.vmem [shape: f32[8,128], index: 0, kind: input, shape index: {}]   ;;  %s288_s1 = inlined_call_operand.hbm [shape: f32[128,128], index: 1, kind: input, shape index: {}]   ;;  %s289_s2 = inlined_call_operand.vmem [shape: f32[1,128], index: 2, kind: input, shape index: {}]   ;;  %s290_s3 = inlined_call_operand.hbm [shape: f32[8,128], index: 3, kind: output, shape index: {}]  }
   0x1   :  { %9 = vsyncpa [#allocation4], 0  ;;  %s249_s12 = smov [#allocation2]  }
   0x2   :  { %s17_s13 = sshll.u32 %s249_s12, 4  ;;  %s18_s13 = int_to_ptr.vmem [resolvable:$true] %s17_s13 }
   0x3   :  { %s213_s14 = scalar_lea.vmem %s18_s13, 2048  ;;  %p218_p1 = scmp.lt.s32.totalorder %s18_s13, %s18_s13 }
   0x4   :  { %p214_p0 = scmp.ne.s32.totalorder %s18_s13, %s213_s14  ;;  %p219_p2 = scmp.lt.s32.totalorder %s213_s14, %s213_s14 }
   0x6   :  { %p220_p3 = por %p219_p2, %p218_p1 }
   0x8   :  { %p221_p4 = pnand %p220_p3, %p214_p0 }
   0xa   :  { %224 = shalt.err (!%p221_p4)
}
   0xb   :  { %s250_s15 = smov 128   ;;  %s251_s16 = smov 8  }
   0xc   :  { %23 = dma.hbm_to_vmem [thread:$0]  %s288_s1, 2048, %s18_s13, [#allocation3], %s250_s15, %s250_s15, %s251_s16  }
   0xd   :  { %245 = dma.done.wait [#allocation3], 2048  }
   0xe   :  { %246 = vsyncadd [#allocation3], 4294965248  ;;  %v252_v0 = vmov 0.0   ;;  %vm253_vm0 = vmmov 0   ;;  %v58_v1 = vld [vmem:[#allocation2 + $0x78] sm:$0xff]  ;;  %v57_v2 = vld [vmem:[#allocation2 + $0x70] sm:$0xff] }
   0xf   :  { %164 = vmatprep.subr.mxu0 %v252_v0  ;;  %196 = vmatprep.mubr.msk.f32.mxu0 %vm253_vm0, %v252_v0  ;;  %v56_v3 = vld [vmem:[#allocation2 + $0x68] sm:$0xff]  ;;  %v55_v4 = vld [vmem:[#allocation2 + $0x60] sm:$0xff]  ;;  %v54_v5 = vld [vmem:[#allocation2 + $0x58] sm:$0xff]  ;;  %s254_s22 = smov [#allocation5]  }
  0x10   :  { %165 = vmatpush3.msra.mxu0 %v58_v1  ;;  %v53_v6 = vld [vmem:[#allocation2 + $0x50] sm:$0xff]  ;;  %v52_v7 = vld [vmem:[#allocation2 + $0x48] sm:$0xff]  ;;  %v51_v8 = vld [vmem:[#allocation2 + $0x40] sm:$0xff]  ;;  %s137_s23 = sshll.u32 %s254_s22, 4  ;;  %s138_s23 = int_to_ptr.vmem [resolvable:$true] %s137_s23 }
  0x11   :  { %166 = vmatprep.subr.mxu0 %v252_v0  ;;  %v50_v9 = vld [vmem:[#allocation2 + $0x38] sm:$0xff]  ;;  %v49_v10 = vld [vmem:[#allocation2 + $0x30] sm:$0xff]  ;;  %v48_v11 = vld [vmem:[#allocation2 + $0x28] sm:$0xff]  ;;  %s225_s24 = scalar_lea.vmem %s138_s23, 128  ;;  %p230_p6 = scmp.lt.s32.totalorder %s138_s23, %s138_s23 }
  0x12   :  { %167 = vmatpush3.msra.mxu0 %v57_v2  ;;  %v47_v12 = vld [vmem:[#allocation2 + $0x20] sm:$0xff]  ;;  %v46_v13 = vld [vmem:[#allocation2 + $0x18] sm:$0xff]  ;;  %v45_v14 = vld [vmem:[#allocation2 + $0x10] sm:$0xff]  ;;  %p226_p5 = scmp.ne.s32.totalorder %s138_s23, %s225_s24  ;;  %p231_p7 = scmp.lt.s32.totalorder %s225_s24, %s225_s24 }
  0x13   :  { %168 = vmatprep.subr.mxu0 %v252_v0  ;;  %v44_v15 = vld [vmem:[#allocation2 + $0x8] sm:$0xff]  ;;  %v43_v16 = vld [vmem:[#allocation2] sm:$0xff] }
  0x14   :  { %169 = vmatpush3.msra.mxu0 %v56_v3  ;;  %v42_v17 = vld [vmem:[%s287_s0] sm:$0xff]  ;;  %p232_p8 = por %p231_p7, %p230_p6 }
  0x15   :  { %170 = vmatprep.subr.mxu0 %v252_v0  ;;  %v146_v18 = vld [vmem:[%s289_s2] ss:$0 sm:$0xff] }
  0x16   :  { %171 = vmatpush3.msra.mxu0 %v55_v4  ;;  %p233_p9 = pnand %p232_p8, %p226_p5 }
  0x17   :  { %172 = vmatprep.subr.mxu0 %v252_v0 }
  0x18   :  { %173 = vmatpush3.msra.mxu0 %v54_v5 }
  0x19   :  { %174 = vmatprep.subr.mxu0 %v252_v0 }
  0x1a   :  { %175 = vmatpush3.msra.mxu0 %v53_v6 }
  0x1b   :  { %176 = vmatprep.subr.mxu0 %v252_v0 }
  0x1c   :  { %177 = vmatpush3.msra.mxu0 %v52_v7 }
  0x1d   :  { %178 = vmatprep.subr.mxu0 %v252_v0 }
  0x1e   :  { %179 = vmatpush3.msra.mxu0 %v51_v8 }
  0x1f   :  { %180 = vmatprep.subr.mxu0 %v252_v0 }
  0x20   :  { %181 = vmatpush3.msra.mxu0 %v50_v9 }
  0x21   :  { %182 = vmatprep.subr.mxu0 %v252_v0 }
  0x22   :  { %183 = vmatpush3.msra.mxu0 %v49_v10 }
  0x23   :  { %184 = vmatprep.subr.mxu0 %v252_v0 }
  0x24   :  { %185 = vmatpush3.msra.mxu0 %v48_v11 }
  0x25   :  { %186 = vmatprep.subr.mxu0 %v252_v0 }
  0x26   :  { %187 = vmatpush3.msra.mxu0 %v47_v12 }
  0x27   :  { %188 = vmatprep.subr.mxu0 %v252_v0 }
  0x28   :  { %189 = vmatpush3.msra.mxu0 %v46_v13 }
  0x29   :  { %190 = vmatprep.subr.mxu0 %v252_v0 }
  0x2a   :  { %191 = vmatpush3.msra.mxu0 %v45_v14 }
  0x2b   :  { %192 = vmatprep.subr.mxu0 %v252_v0 }
  0x2c   :  { %193 = vmatpush3.msra.mxu0 %v44_v15 }
  0x2d   :  { %194 = vmatprep.subr.mxu0 %v252_v0 }
  0x2e   :  { %195 = vmatpush3.msra.mxu0 %v43_v16 }
  0x2f   :  { %197 = vmatmul.mubr.f32.vlgmr.msra.gmra.mxu0 %v42_v17 }
  0xef   :  { %v125_v19 = vpop.f32.mrf.mxu0 }
  0xf0   :  { %v129_v20 = vadd.f32 %v146_v18, %v125_v19 }
  0xf1   :  { %v198_v21 = vpop.f32.mrf.mxu0 }
  0xf2   :  { %130 = vst [vmem:[#allocation5] sm:$0xff] %v129_v20 }
  0xf3   :  { %236 = shalt.err (!%p233_p9)
}
  0xf4   :  { %140 = dma.vmem_to_hbm [thread:$0]  %s138_s23, 128, %s290_s3, [#allocation4]  }
  0xf5   :  { %247 = dma.done.wait [#allocation4], 128  }
  0xf6   :  { %248 = vsyncadd [#allocation4], 4294967168 }
  0xf7   :  { %144 = vsyncpa [#allocation3], 1 }
  0xf8   :  { %145 = vsyncpa [#allocation4], 1 }

</bundles_post_ra>
